<compile_context>
chip_gen: v6e
topology: v6e:2x2x1
jax: 0.10.0
libtpu: 0.0.40
codegen_flags: <defaults>
</compile_context>

<pallas_src>
import functools

import jax
import jax.numpy as jnp
from jax.experimental import pallas as pl
from jax.experimental.pallas import tpu as pltpu


# ---------------------------------------------------------------------------
# Kernel 1: fused Linear  o = x @ w + b, tiled over M.
# Used for the hoisted input projection and the hoisted output projection --
# one big MXU-friendly matmul each instead of T tiny per-timestep matmuls.
# ---------------------------------------------------------------------------
def _linear_kernel(x_ref, w_ref, b_ref, o_ref):
    o_ref[...] = (jnp.dot(x_ref[...], w_ref[...],
                          preferred_element_type=jnp.float32)
                  + b_ref[...]).astype(o_ref.dtype)


def linear_pallas(x, w, b, *, block_m=256):
    """x: [M, K], w: [K, N], b: [1, N] -> [M, N] (float32)."""
    M, K = x.shape
    N = w.shape[1]
    bm = M if M <= block_m else block_m
    return pl.pallas_call(
        _linear_kernel,
        out_shape=jax.ShapeDtypeStruct((M, N), jnp.float32),
        grid_spec=pltpu.PrefetchScalarGridSpec(
            num_scalar_prefetch=0,
            grid=(pl.cdiv(M, bm),),
            in_specs=[
                pl.BlockSpec((bm, K), lambda m: (m, 0)),   # activations
                pl.BlockSpec((K, N), lambda m: (0, 0)),    # weight (resident)
                pl.BlockSpec((1, N), lambda m: (0, 0)),    # bias
            ],
            out_specs=pl.BlockSpec((bm, N), lambda m: (m, 0)),
        ),
        compiler_params=pltpu.CompilerParams(
            dimension_semantics=("parallel",)),
    )(x, w, b)


# ---------------------------------------------------------------------------
# Kernel 2: LSTM recurrence, Tc timesteps per grid step.
# gates_x already contains x @ W_ih^T + b_ih + b_hh, so each step only does
# h_prev @ W_hh^T plus the gate nonlinearities / cell update.
# ---------------------------------------------------------------------------
def _lstm_recurrence_kernel(gx_ref, w_hh_ref, hs_ref, h_ref, c_ref, *, hdim, tc):
    chunk = pl.program_id(0)

    @pl.when(chunk == 0)
    def _():
        h_ref[...] = jnp.zeros_like(h_ref)
        c_ref[...] = jnp.zeros_like(c_ref)

    w_hh = w_hh_ref[...]                       # hoisted: loaded once per chunk

    def step(i, carry):
        h, c = carry
        gates = gx_ref[i] + jnp.dot(h, w_hh, preferred_element_type=jnp.float32)
        # PyTorch gate order [i, f, g, o].
        # TODO(synk): for hdim >= 128 these slices are whole-vreg lane-aligned;
        # at hdim=32 Mosaic emits sub-vreg selects (minor at this scale).
        i_g = jax.nn.sigmoid(gates[:, 0 * hdim:1 * hdim])
        f_g = jax.nn.sigmoid(gates[:, 1 * hdim:2 * hdim])
        g_g = jnp.tanh(gates[:, 2 * hdim:3 * hdim])
        o_g = jax.nn.sigmoid(gates[:, 3 * hdim:4 * hdim])
        c_new = f_g * c + i_g * g_g
        h_new = o_g * jnp.tanh(c_new)
        hs_ref[i] = h_new.astype(hs_ref.dtype)
        return (h_new, c_new)

    h_fin, c_fin = jax.lax.fori_loop(0, tc, step, (h_ref[...], c_ref[...]),
                                     unroll=True)
    h_ref[...] = h_fin
    c_ref[...] = c_fin


def lstm_recurrence_pallas(gates_x, w_hh_t, *, max_chunk=32):
    """gates_x: [T, B, 4H] (x@W_ih^T + b_ih + b_hh), w_hh_t: [H, 4H] -> hs [T, B, H]."""
    T, B, H4 = gates_x.shape
    H = H4 // 4
    # Largest timestep-chunk that divides T (amortizes ~600-cycle grid-step cost).
    tc = next(d for d in (max_chunk, 16, 8, 4, 2, 1) if d <= T and T % d == 0)

    kernel = functools.partial(_lstm_recurrence_kernel, hdim=H, tc=tc)
    return pl.pallas_call(
        kernel,
        out_shape=jax.ShapeDtypeStruct((T, B, H), jnp.float32),
        grid_spec=pltpu.PrefetchScalarGridSpec(
            num_scalar_prefetch=0,
            grid=(T // tc,),
            in_specs=[
                pl.BlockSpec((tc, B, 4 * H), lambda t: (t, 0, 0)),  # gates_x chunk
                pl.BlockSpec((H, 4 * H), lambda t: (0, 0)),         # W_hh^T
            ],
            out_specs=pl.BlockSpec((tc, B, H), lambda t: (t, 0, 0)),
            scratch_shapes=[
                pltpu.VMEM((B, H), jnp.float32),   # h state (persists over chunks)
                pltpu.VMEM((B, H), jnp.float32),   # c state
            ],
        ),
        compiler_params=pltpu.CompilerParams(
            dimension_semantics=("arbitrary",),    # recurrence -> sequential
        ),
    )(gates_x, w_hh_t)


# ---------------------------------------------------------------------------
# Full forward: Embedding -> LSTM -> Linear
# ---------------------------------------------------------------------------
def my_lstm_forward(x_ids, params):
    """[B, T] int ids -> [B, T, posn] float32."""
    B, T = x_ids.shape
    H = params["w_hh"].shape[1]
    P = params["w_out"].shape[0]

    # Pad batch to a multiple of 8 sublanes (padded rows are independent and
    # get sliced off at the end).
    Bp = ((B + 7) // 8) * 8
    if Bp != B:
        x_ids = jnp.pad(x_ids, ((0, Bp - B), (0, 0)))

    # Embedding gather, directly time-major: [T, Bp, H].
    # TODO(synk): could be folded into the kernel with num_scalar_prefetch row
    # gather; kept as plain-JAX glue here.
    ex_tbh = params["emb"][x_ids.T]

    # Hoisted input projection: one big matmul for all timesteps.
    w_ih_t = params["w_ih"].T                               # [H, 4H]
    b_comb = (params["b_ih"] + params["b_hh"])[None, :]     # [1, 4H]
    gates_x = linear_pallas(ex_tbh.reshape(T * Bp, H), w_ih_t, b_comb)
    gates_x = gates_x.reshape(T, Bp, 4 * H)

    # Sequential recurrence -> hidden states [T, Bp, H].
    hs = lstm_recurrence_pallas(gates_x, params["w_hh"].T)

    # Hoisted output Linear: one big matmul.
    out = linear_pallas(hs.reshape(T * Bp, H), params["w_out"].T,
                        params["b_out"][None, :])
    out = out.reshape(T, Bp, P)

    # Back to batch-first, drop batch padding.
    return jnp.transpose(out, (1, 0, 2))[:B]


# ---------------------------------------------------------------------------
# Pure-JAX reference (lax.scan) matching PyTorch nn.LSTM semantics.
# ---------------------------------------------------------------------------
def _reference_forward(x_ids, params):
    H = params["w_hh"].shape[1]
    ex = params["emb"][x_ids]                       # [B, T, H]
    ex_tbh = jnp.transpose(ex, (1, 0, 2))
    b = params["b_ih"] + params["b_hh"]

    def step(carry, x_t):
        h, c = carry
        gates = x_t @ params["w_ih"].T + h @ params["w_hh"].T + b
        i_g = jax.nn.sigmoid(gates[:, 0 * H:1 * H])
        f_g = jax.nn.sigmoid(gates[:, 1 * H:2 * H])
        g_g = jnp.tanh(gates[:, 2 * H:3 * H])
        o_g = jax.nn.sigmoid(gates[:, 3 * H:4 * H])
        c_new = f_g * c + i_g * g_g
        h_new = o_g * jnp.tanh(c_new)
        return (h_new, c_new), h_new

    B = x_ids.shape[0]
    init = (jnp.zeros((B, H), jnp.float32), jnp.zeros((B, H), jnp.float32))
    _, hs = jax.lax.scan(step, init, ex_tbh)        # [T, B, H]
    out = hs @ params["w_out"].T + params["b_out"]  # [T, B, P]
    return jnp.transpose(out, (1, 0, 2))


def init_params(key, vocsize, posn, hdim):
    """Deterministic parameter init mirroring the PyTorch module's shapes."""
    ks = jax.random.split(key, 8)
    k = 1.0 / jnp.sqrt(hdim)
    u = lambda kk, shape: jax.random.uniform(kk, shape, jnp.float32, -k, k)
    return {
        "emb":   jax.random.normal(ks[0], (vocsize, hdim), jnp.float32),
        "w_ih":  u(ks[1], (4 * hdim, hdim)),
        "w_hh":  u(ks[2], (4 * hdim, hdim)),
        "b_ih":  u(ks[3], (4 * hdim,)),
        "b_hh":  u(ks[4], (4 * hdim,)),
        "w_out": u(ks[5], (posn, hdim)),
        "b_out": u(ks[6], (posn,)),
    }


if __name__ == "__main__":
    VOCSIZE, POSN, HDIM = 50, 16, 32
    B, T = 2, 8

    key = jax.random.PRNGKey(0)
    pkey, xkey = jax.random.split(key)
    params = init_params(pkey, VOCSIZE, POSN, HDIM)
    x_ids = jax.random.randint(xkey, (B, T), 0, VOCSIZE, dtype=jnp.int32)

    out = jax.block_until_ready(my_lstm_forward(x_ids, params))
    assert out.shape == (B, T, POSN), out.shape

    ref = jax.block_until_ready(_reference_forward(x_ids, params))
    assert jnp.allclose(out, ref, atol=1e-3, rtol=1e-3), "mismatch vs reference"

    print("KERNEL_OK")
</pallas_src>

<mosaic_0001>
module attributes {stable_mosaic.version = 11 : i64} {
  func.func @_linear_kernel(%arg0: i32, %arg1: memref<64x32xf32, #tpu.memory_space<vmem>>, %arg2: memref<32x128xf32, #tpu.memory_space<vmem>>, %arg3: memref<1x128xf32, #tpu.memory_space<vmem>>, %arg4: memref<64x128xf32, #tpu.memory_space<vmem>>) attributes {dimension_semantics = [#tpu.dimension_semantics<parallel>], iteration_bounds = array<i64: 1>, scalar_prefetch = 0 : i64, scratch_operands = 0 : i64, tpu.core_type = #tpu.core_type<tc>, window_params = [{transform_indices = @transform_0, window_bounds = array<i64: 64, 32>}, {pipeline_mode = #tpu.pipeline_mode<synchronous>, transform_indices = @transform_1, window_bounds = array<i64: 32, 128>}, {pipeline_mode = #tpu.pipeline_mode<synchronous>, transform_indices = @transform_2, window_bounds = array<i64: 1, 128>}, {transform_indices = @transform_3, window_bounds = array<i64: 64, 128>}]} {
    %c0 = arith.constant 0 : index
    %c0_0 = arith.constant 0 : index
    %0 = vector.load %arg1[%c0, %c0_0] : memref<64x32xf32, #tpu.memory_space<vmem>>, vector<64x32xf32>
    %c0_1 = arith.constant 0 : index
    %c0_2 = arith.constant 0 : index
    %1 = vector.load %arg2[%c0_1, %c0_2] : memref<32x128xf32, #tpu.memory_space<vmem>>, vector<32x128xf32>
    %cst = arith.constant dense<0.000000e+00> : vector<64x128xf32>
    %2 = tpu.matmul %0, %1, %cst {dimension_numbers = #tpu.dot_dimension_numbers<[1], [0], [0], [1], [0, 0, 1, 1], [], []>} : vector<64x32xf32>, vector<32x128xf32>, vector<64x128xf32> -> vector<64x128xf32>
    %c0_3 = arith.constant 0 : index
    %c0_4 = arith.constant 0 : index
    %3 = vector.load %arg3[%c0_3, %c0_4] : memref<1x128xf32, #tpu.memory_space<vmem>>, vector<1x128xf32>
    %4 = vector.broadcast %3 : vector<1x128xf32> to vector<64x128xf32>
    %5 = arith.addf %2, %4 : vector<64x128xf32>
    %c0_5 = arith.constant 0 : index
    %c0_6 = arith.constant 0 : index
    %6 = vector.load %arg4[%c0_5, %c0_6] : memref<64x128xf32, #tpu.memory_space<vmem>>, vector<64x128xf32>
    tpu.vector_store %arg4[%c0_5, %c0_6], %5 {strides = array<i32>} : memref<64x128xf32, #tpu.memory_space<vmem>>, vector<64x128xf32>,
    return
  }
  func.func @transform_0(%arg0: i32) -> (i32, i32) {
    %c0_i32 = arith.constant 0 : i32
    %c0_i32_0 = arith.constant 0 : i32
    return %arg0, %c0_i32 : i32, i32
  }
  func.func @transform_1(%arg0: i32) -> (i32, i32) {
    %c0_i32 = arith.constant 0 : i32
    %c0_i32_0 = arith.constant 0 : i32
    %c0_i32_1 = arith.constant 0 : i32
    return %c0_i32, %c0_i32_0 : i32, i32
  }
  func.func @transform_2(%arg0: i32) -> (i32, i32) {
    %c0_i32 = arith.constant 0 : i32
    %c0_i32_0 = arith.constant 0 : i32
    %c0_i32_1 = arith.constant 0 : i32
    return %c0_i32, %c0_i32_0 : i32, i32
  }
  func.func @transform_3(%arg0: i32) -> (i32, i32) {
    %c0_i32 = arith.constant 0 : i32
    %c0_i32_0 = arith.constant 0 : i32
    return %arg0, %c0_i32 : i32, i32
  }
}

</mosaic_0001>

<bundles_post_ra>
// kernel: tpu_custom_call.1
= control target key start
LH: loop header
LB: loop body
LE: loop exit
PB: predicated region body
PF: predicated region fallthrough
CT: control target
= control target key end

     0   :  { %s335_s0 = inlined_call_operand.vmem [shape: f32[64,32], index: 0, kind: input, shape index: {}]   ;;  %s336_s1 = inlined_call_operand.vmem [shape: f32[32,128], index: 1, kind: input, shape index: {}]   ;;  %s337_s2 = inlined_call_operand.vmem [shape: f32[1,128], index: 2, kind: input, shape index: {}]   ;;  %s338_s3 = inlined_call_operand.hbm [shape: f32[64,128], index: 3, kind: output, shape index: {}]  }
   0x1   :  { %v26_v0 = vld [vmem:[%s336_s1 + $0x18] sm:$0xff]  ;;  %v25_v1 = vld [vmem:[%s336_s1 + $0x10] sm:$0xff]  ;;  %v24_v2 = vld [vmem:[%s336_s1 + $0x8] sm:$0xff] }
   0x2   :  { %209 = vmatprep.subr.mxu0 %v26_v0  ;;  %229 = vmatprep.subr.mxu1 %v26_v0  ;;  %v23_v3 = vld [vmem:[%s336_s1] sm:$0xff] }
   0x3   :  { %210 = vmatpush3.msra.mxu0 %v26_v0  ;;  %233 = vmatpush3.msra.mxu1 %v26_v0 }
   0x4   :  { %211 = vmatprep.subr.mxu0 %v25_v1  ;;  %230 = vmatprep.subr.mxu1 %v25_v1 }
   0x5   :  { %212 = vmatpush3.msra.mxu0 %v25_v1  ;;  %234 = vmatpush3.msra.mxu1 %v25_v1 }
   0x6   :  { %8 = vsyncpa [#allocation3], 0  ;;  %213 = vmatprep.subr.mxu0 %v24_v2  ;;  %231 = vmatprep.subr.mxu1 %v24_v2  ;;  %v15_v4 = vld [vmem:[%s335_s0] sm:$0xff]  ;;  %vm34_vm0 = vcmask 261120   ;;  %v16_v6 = vld [vmem:[%s335_s0 + $0x8] sm:$0xff]  ;;  %s262_s10 = smov [#allocation2]  }
   0x7   :  { %214 = vmatpush3.msra.mxu0 %v24_v2  ;;  %235 = vmatpush3.msra.mxu1 %v24_v2  ;;  %v19_v5 = vld [vmem:[%s335_s0 + $0x20] sm:$0xff]  ;;  %v20_v7 = vld [vmem:[%s335_s0 + $0x28] sm:$0xff]  ;;  %v17_v8 = vld [vmem:[%s335_s0 + $0x10] sm:$0xff] }
   0x8   :  { %215 = vmatprep.subr.mxu0 %v23_v3  ;;  %232 = vmatprep.subr.mxu1 %v23_v3  ;;  %v21_v9 = vld [vmem:[%s335_s0 + $0x30] sm:$0xff]  ;;  %v18_v10 = vld [vmem:[%s335_s0 + $0x18] sm:$0xff]  ;;  %v188_v12 = vld [vmem:[%s337_s2] ss:$0 sm:$0xff] }
   0x9   :  { %216 = vmatpush3.msra.mxu0 %v23_v3  ;;  %236 = vmatpush3.msra.mxu1 %v23_v3  ;;  %v22_v11 = vld [vmem:[%s335_s0 + $0x38] sm:$0xff]  ;;  %s177_s0 = sshll.u32 %s262_s10, 4  ;;  %s178_s0 = int_to_ptr.vmem [resolvable:$true] %s177_s0 }
   0xa   :  { %217 = vmatprep.mubr.msk.f32.mxu0 %vm34_vm0, %v15_v4  ;;  %223 = vmatprep.mubr.msk.f32.mxu1 %vm34_vm0, %v19_v5  ;;  %s240_s2 = scalar_lea.vmem %s178_s0, 1024  ;;  %p245_p1 = scmp.lt.s32.totalorder %s178_s0, %s178_s0 }
   0xb   :  { %218 = vmatmul.mubr.msk.f32.vlgmr.msra.gmra.mxu0 %vm34_vm0, %v16_v6  ;;  %224 = vmatmul.mubr.msk.f32.vlgmr.msra.gmra.mxu1 %vm34_vm0, %v20_v7  ;;  %p241_p0 = scmp.ne.s32.totalorder %s178_s0, %s240_s2  ;;  %p246_p2 = scmp.lt.s32.totalorder %s240_s2, %s240_s2 }
   0xc   :  { %220 = vmatprep.mubr.msk.f32.mxu0 %vm34_vm0, %v17_v8  ;;  %226 = vmatprep.mubr.msk.f32.mxu1 %vm34_vm0, %v21_v9 }
   0xd   :  { %p247_p3 = por %p246_p2, %p245_p1 }
   0xf   :  { %221 = vmatmul.mubr.msk.f32.gmra.mxu0 %vm34_vm0, %v18_v10  ;;  %227 = vmatmul.mubr.msk.f32.gmra.mxu1 %vm34_vm0, %v22_v11  ;;  %p248_p4 = pnand %p247_p3, %p241_p0 }
  0xcb   :  { %v219_v13 = vpop.f32.mrf.mxu0  ;;  %v225_v14 = vpop.f32.mrf.mxu1 }
  0xcc   :  { %v131_v15 = vadd.f32 %v219_v13, %v188_v12  ;;  %v151_v16 = vadd.f32 %v225_v14, %v188_v12 }
  0xcd   :  { %v125_v17 = vpop.f32.mrf.mxu0  ;;  %v145_v18 = vpop.f32.mrf.mxu1 }
  0xce   :  { %165 = vst [vmem:[#allocation2 + $0x8] sm:$0xff] %v131_v15  ;;  %169 = vst [vmem:[#allocation2 + $0x28] sm:$0xff] %v151_v16  ;;  %v126_v19 = vadd.f32 %v188_v12, %v125_v17  ;;  %v146_v20 = vadd.f32 %v188_v12, %v145_v18 }
  0xcf   :  { %v222_v21 = vpop.f32.mrf.mxu0  ;;  %v228_v22 = vpop.f32.mrf.mxu1 }
  0xd0   :  { %164 = vst [vmem:[#allocation2] sm:$0xff] %v126_v19  ;;  %168 = vst [vmem:[#allocation2 + $0x20] sm:$0xff] %v146_v20  ;;  %v141_v23 = vadd.f32 %v222_v21, %v188_v12  ;;  %v161_v24 = vadd.f32 %v228_v22, %v188_v12 }
  0xd1   :  { %v135_v25 = vpop.f32.mrf.mxu0  ;;  %v155_v26 = vpop.f32.mrf.mxu1 }
  0xd2   :  { %167 = vst [vmem:[#allocation2 + $0x18] sm:$0xff] %v141_v23  ;;  %171 = vst [vmem:[#allocation2 + $0x38] sm:$0xff] %v161_v24  ;;  %v136_v27 = vadd.f32 %v188_v12, %v135_v25  ;;  %v156_v28 = vadd.f32 %v188_v12, %v155_v26 }
  0xd4   :  { %166 = vst [vmem:[#allocation2 + $0x10] sm:$0xff] %v136_v27  ;;  %170 = vst [vmem:[#allocation2 + $0x30] sm:$0xff] %v156_v28 }
  0xd5   :  { %251 = shalt.err (!%p248_p4)
}
  0xd6   :  { %s263_s11 = smov 128   ;;  %s264_s12 = smov 8  }
  0xd7   :  { %183 = dma.vmem_to_hbm [thread:$0]  %s178_s0, 1024, %s338_s3, [#allocation3], %s263_s11, %s263_s11, %s264_s12  }
  0xd8   :  { %260 = dma.done.wait [#allocation3], 1024  }
  0xd9   :  { %261 = vsyncadd [#allocation3], 4294966272 }
  0xda   :  { %187 = vsyncpa [#allocation3], 1 }

</bundles_post_ra>
